<compile_context>
chip_gen: v5e
topology: v5e:2x2
jax: 0.10.0
libtpu: 0.0.40
codegen_flags: <defaults>
</compile_context>

<pallas_src>
import functools

import jax
import jax.numpy as jnp
from jax.experimental import pallas as pl
from jax.experimental.pallas import tpu as pltpu


def _lstm_dec_kernel(x_ref, h0_ref, c0_ref, wih_ref, whh_ref, b_ref,
                     wlin_ref, blin_ref,
                     out_ref, hn_ref, cn_ref,
                     hs_sc, *, hidden_size, seq_len, batch_size):
    H = hidden_size
    T = seq_len
    B = batch_size

    # Hoist every weight / bias load out of the unrolled recurrence.
    # The i/f/o gate columns were pre-scaled by 0.5 in the wrapper.
    wih = wih_ref[...]        # (I, 4H)
    whh = whh_ref[...]        # (H, 4H)
    b = b_ref[...]            # (1, 4H)  = b_ih + b_hh (i/f/o columns * 0.5)
    wlin = wlin_ref[...]      # (H, I)
    blin = blin_ref[...]      # (1, I)

    # Time-parallel input projection as ONE batched matmul, bias folded in:
    #   (B*T, I) @ (I, 4H) -> (B, T, 4H).  x arrives pre-flattened from the
    #   wrapper; the (B*T,4H)->(B,T,4H) split is layout-preserving for T%8==0.
    xp = (jnp.dot(x_ref[...].astype(jnp.float32), wih,
                  preferred_element_type=jnp.float32) + b
          ).reshape(B, T, 4 * H)

    h = h0_ref[...].astype(jnp.float32)   # (B, H)
    c = c0_ref[...].astype(jnp.float32)   # (B, H)

    # Fully unrolled serial recurrence (T is a trace-time constant).
    # PyTorch gate order: [i, f, g, o].
    for t in range(T):
        gates = xp[:, t, :] + jnp.dot(h, whh,
                                      preferred_element_type=jnp.float32)
        th = jnp.tanh(gates)        # ONE full-width (128-lane) EUP push
        sg = 0.5 * th + 0.5         # full-width sigmoid for the i/f/o columns
        i_g = sg[:, 0 * H:1 * H]
        f_g = sg[:, 1 * H:2 * H]
        g_g = th[:, 2 * H:3 * H]
        o_g = sg[:, 3 * H:4 * H]
        c = f_g * c + i_g * g_g
        h = o_g * jnp.tanh(c)
        hs_sc[:, t, :] = h          # static-index 2-D store, no reshape

    # Batched output projection over all timesteps -> single full-block store.
    hs_flat = hs_sc[...].reshape(B * T, H)
    y = jnp.dot(hs_flat, wlin, preferred_element_type=jnp.float32) + blin
    out_ref[...] = y.astype(out_ref.dtype)     # (B*T, I); wrapper un-flattens
    hn_ref[...] = h.astype(hn_ref.dtype)
    cn_ref[...] = c.astype(cn_ref.dtype)


def lstm_decoder_forward(x, encoder_hidden_states, params):
    """x: (B, T, I) batch_first.  encoder_hidden_states: (h0, c0), each (1, B, H).
    Returns (output (B, T, I), (h_n (1, B, H), c_n (1, B, H)))."""
    w_ih, w_hh, b_ih, b_hh, w_lin, b_lin = (
        params["w_ih"], params["w_hh"], params["b_ih"], params["b_hh"],
        params["w_lin"], params["b_lin"])
    h0, c0 = encoder_hidden_states
    h0 = h0[0]                              # (B, H)   num_layers == 1
    c0 = c0[0]

    B, T, I = x.shape
    H = h0.shape[-1]
    G = 4 * H

    # Pre-scale the sigmoid gates (i, f, o) by 0.5 so a SINGLE full-width tanh
    # in the kernel yields every nonlinearity: sigmoid(x) = 0.5*tanh(x/2)+0.5.
    f32 = jnp.float32
    gate_scale = jnp.concatenate([
        jnp.full((H,), 0.5, f32), jnp.full((H,), 0.5, f32),
        jnp.ones((H,), f32), jnp.full((H,), 0.5, f32)])       # [i, f, g, o]

    wih_t = w_ih.T.astype(f32) * gate_scale                    # (I, 4H)
    whh_t = w_hh.T.astype(f32) * gate_scale                    # (H, 4H)
    b_comb = ((b_ih + b_hh).astype(f32) * gate_scale).reshape(1, G)
    wlin_t = w_lin.T.astype(f32)                               # (H, I)
    blin = b_lin.astype(f32).reshape(1, I)                     # (1, I)

    kernel = functools.partial(_lstm_dec_kernel, hidden_size=H, seq_len=T,
                               batch_size=B)

    out, h_n, c_n = pl.pallas_call(
        kernel,
        out_shape=(
            jax.ShapeDtypeStruct((B * T, I), x.dtype),
            jax.ShapeDtypeStruct((B, H), h0.dtype),
            jax.ShapeDtypeStruct((B, H), c0.dtype),
        ),
        # No grid: everything fits comfortably in VMEM as full-array blocks.
        scratch_shapes=[
            pltpu.VMEM((B, T, H), jnp.float32),   # stacked hidden states
        ],
        compiler_params=pltpu.CompilerParams(
            vmem_limit_bytes=32 * 1024 * 1024),
    )(x.reshape(B * T, I), h0, c0, wih_t, whh_t, b_comb, wlin_t, blin)

    # Wrapper-side reshape is free (contiguous metadata change).
    return out.reshape(B, T, I), (h_n[None], c_n[None])


def ref_forward(x, encoder_hidden_states, params):
    """Pure-JAX reference matching PyTorch nn.LSTM(batch_first) + nn.Linear."""
    w_ih, w_hh, b_ih, b_hh, w_lin, b_lin = (
        params["w_ih"], params["w_hh"], params["b_ih"], params["b_hh"],
        params["w_lin"], params["b_lin"])
    h, c = encoder_hidden_states[0][0], encoder_hidden_states[1][0]
    B, T, I = x.shape
    H = h.shape[-1]
    outs = []
    for t in range(T):
        gates = x[:, t] @ w_ih.T + b_ih + h @ w_hh.T + b_hh
        i_g = jax.nn.sigmoid(gates[:, :H])
        f_g = jax.nn.sigmoid(gates[:, H:2 * H])
        g_g = jnp.tanh(gates[:, 2 * H:3 * H])
        o_g = jax.nn.sigmoid(gates[:, 3 * H:])
        c = f_g * c + i_g * g_g
        h = o_g * jnp.tanh(c)
        outs.append(h @ w_lin.T + b_lin)
    return jnp.stack(outs, axis=1), (h[None], c[None])


if __name__ == "__main__":
    # Small shapes consistent with the module: batch=2, seq=8, input_size=4, hidden=32
    B, T, I, H = 2, 8, 4, 32

    key = jax.random.PRNGKey(0)
    keys = jax.random.split(key, 9)
    scale = 1.0 / jnp.sqrt(H)   # PyTorch default init range for LSTM/Linear

    params = {
        "w_ih": jax.random.uniform(keys[0], (4 * H, I), jnp.float32, -scale, scale),
        "w_hh": jax.random.uniform(keys[1], (4 * H, H), jnp.float32, -scale, scale),
        "b_ih": jax.random.uniform(keys[2], (4 * H,), jnp.float32, -scale, scale),
        "b_hh": jax.random.uniform(keys[3], (4 * H,), jnp.float32, -scale, scale),
        "w_lin": jax.random.uniform(keys[4], (I, H), jnp.float32, -scale, scale),
        "b_lin": jax.random.uniform(keys[5], (I,), jnp.float32, -scale, scale),
    }

    x = jax.random.normal(keys[6], (B, T, I), jnp.float32)
    h0 = jax.random.normal(keys[7], (1, B, H), jnp.float32)
    c0 = jax.random.normal(keys[8], (1, B, H), jnp.float32)

    out, (h_n, c_n) = lstm_decoder_forward(x, (h0, c0), params)
    jax.block_until_ready((out, h_n, c_n))

    out_ref, (h_ref, c_ref) = ref_forward(x, (h0, c0), params)
    assert jnp.allclose(out, out_ref, rtol=1e-4, atol=1e-4)
    assert jnp.allclose(h_n, h_ref, rtol=1e-4, atol=1e-4)
    assert jnp.allclose(c_n, c_ref, rtol=1e-4, atol=1e-4)

    print("KERNEL_OK")
</pallas_src>

<mosaic_0001>
module attributes {stable_mosaic.version = 11 : i64} {
  func.func @_lstm_dec_kernel(%arg0: memref<16x4xf32, #tpu.memory_space<vmem>>, %arg1: memref<2x32xf32, #tpu.memory_space<vmem>>, %arg2: memref<2x32xf32, #tpu.memory_space<vmem>>, %arg3: memref<4x128xf32, #tpu.memory_space<vmem>>, %arg4: memref<32x128xf32, #tpu.memory_space<vmem>>, %arg5: memref<1x128xf32, #tpu.memory_space<vmem>>, %arg6: memref<32x4xf32, #tpu.memory_space<vmem>>, %arg7: memref<1x4xf32, #tpu.memory_space<vmem>>, %arg8: memref<16x4xf32, #tpu.memory_space<vmem>>, %arg9: memref<2x32xf32, #tpu.memory_space<vmem>>, %arg10: memref<2x32xf32, #tpu.memory_space<vmem>>, %arg11: memref<2x8x32xf32, #tpu.memory_space<vmem>>) attributes {dimension_semantics = [], scalar_prefetch = 0 : i64, scratch_operands = 1 : i64, tpu.core_type = #tpu.core_type<tc>} {
    %c0 = arith.constant 0 : index
    %c0_0 = arith.constant 0 : index
    %0 = vector.load %arg3[%c0, %c0_0] : memref<4x128xf32, #tpu.memory_space<vmem>>, vector<4x128xf32>
    %c0_1 = arith.constant 0 : index
    %c0_2 = arith.constant 0 : index
    %1 = vector.load %arg4[%c0_1, %c0_2] : memref<32x128xf32, #tpu.memory_space<vmem>>, vector<32x128xf32>
    %c0_3 = arith.constant 0 : index
    %c0_4 = arith.constant 0 : index
    %2 = vector.load %arg5[%c0_3, %c0_4] : memref<1x128xf32, #tpu.memory_space<vmem>>, vector<1x128xf32>
    %c0_5 = arith.constant 0 : index
    %c0_6 = arith.constant 0 : index
    %3 = vector.load %arg6[%c0_5, %c0_6] : memref<32x4xf32, #tpu.memory_space<vmem>>, vector<32x4xf32>
    %c0_7 = arith.constant 0 : index
    %c0_8 = arith.constant 0 : index
    %4 = vector.load %arg7[%c0_7, %c0_8] : memref<1x4xf32, #tpu.memory_space<vmem>>, vector<1x4xf32>
    %c0_9 = arith.constant 0 : index
    %c0_10 = arith.constant 0 : index
    %5 = vector.load %arg0[%c0_9, %c0_10] : memref<16x4xf32, #tpu.memory_space<vmem>>, vector<16x4xf32>
    %cst = arith.constant dense<0.000000e+00> : vector<16x128xf32>
    %6 = tpu.matmul %5, %0, %cst {dimension_numbers = #tpu.dot_dimension_numbers<[1], [0], [0], [1], [0, 0, 1, 1], [], []>} : vector<16x4xf32>, vector<4x128xf32>, vector<16x128xf32> -> vector<16x128xf32>
    %7 = vector.broadcast %2 : vector<1x128xf32> to vector<16x128xf32>
    %8 = arith.addf %6, %7 : vector<16x128xf32>
    %9 = vector.shape_cast %8 : vector<16x128xf32> to vector<2x8x128xf32>
    %c0_11 = arith.constant 0 : index
    %c0_12 = arith.constant 0 : index
    %10 = vector.load %arg1[%c0_11, %c0_12] : memref<2x32xf32, #tpu.memory_space<vmem>>, vector<2x32xf32>
    %c0_13 = arith.constant 0 : index
    %c0_14 = arith.constant 0 : index
    %11 = vector.load %arg2[%c0_13, %c0_14] : memref<2x32xf32, #tpu.memory_space<vmem>>, vector<2x32xf32>
    %12 = vector.extract_strided_slice %9 {offsets = [0, 0, 0], sizes = [2, 1, 128], strides = [1, 1, 1]} : vector<2x8x128xf32> to vector<2x1x128xf32>
    %13 = vector.shape_cast %12 : vector<2x1x128xf32> to vector<2x128xf32>
    %cst_15 = arith.constant dense<0.000000e+00> : vector<2x128xf32>
    %14 = tpu.matmul %10, %1, %cst_15 {dimension_numbers = #tpu.dot_dimension_numbers<[1], [0], [0], [1], [0, 0, 1, 1], [], []>} : vector<2x32xf32>, vector<32x128xf32>, vector<2x128xf32> -> vector<2x128xf32>
    %15 = arith.addf %13, %14 : vector<2x128xf32>
    %16 = math.tanh %15 : vector<2x128xf32>
    %cst_16 = arith.constant 5.000000e-01 : f32
    %17 = vector.broadcast %cst_16 : f32 to vector<2x128xf32>
    %18 = arith.mulf %17, %16 : vector<2x128xf32>
    %cst_17 = arith.constant 5.000000e-01 : f32
    %19 = vector.broadcast %cst_17 : f32 to vector<2x128xf32>
    %20 = arith.addf %18, %19 : vector<2x128xf32>
    %21 = vector.extract_strided_slice %20 {offsets = [0, 0], sizes = [2, 32], strides = [1, 1]} : vector<2x128xf32> to vector<2x32xf32>
    %22 = vector.extract_strided_slice %20 {offsets = [0, 32], sizes = [2, 32], strides = [1, 1]} : vector<2x128xf32> to vector<2x32xf32>
    %23 = vector.extract_strided_slice %16 {offsets = [0, 64], sizes = [2, 32], strides = [1, 1]} : vector<2x128xf32> to vector<2x32xf32>
    %24 = vector.extract_strided_slice %20 {offsets = [0, 96], sizes = [2, 32], strides = [1, 1]} : vector<2x128xf32> to vector<2x32xf32>
    %25 = arith.mulf %22, %11 : vector<2x32xf32>
    %26 = arith.mulf %21, %23 : vector<2x32xf32>
    %27 = arith.addf %25, %26 : vector<2x32xf32>
    %28 = math.tanh %27 : vector<2x32xf32>
    %29 = arith.mulf %24, %28 : vector<2x32xf32>
    %c0_18 = arith.constant 0 : index
    %c0_19 = arith.constant 0 : index
    %c0_20 = arith.constant 0 : index
    %30 = vector.load %arg11[%c0_18, %c0_19, %c0_20] : memref<2x8x32xf32, #tpu.memory_space<vmem>>, vector<2x1x32xf32>
    %31 = vector.shape_cast %30 : vector<2x1x32xf32> to vector<2x32xf32>
    %32 = vector.shape_cast %29 : vector<2x32xf32> to vector<2x1x32xf32>
    tpu.vector_store %arg11[%c0_18, %c0_19, %c0_20], %32 {strides = array<i32>} : memref<2x8x32xf32, #tpu.memory_space<vmem>>, vector<2x1x32xf32>,
    %33 = vector.extract_strided_slice %9 {offsets = [0, 1, 0], sizes = [2, 1, 128], strides = [1, 1, 1]} : vector<2x8x128xf32> to vector<2x1x128xf32>
    %34 = vector.shape_cast %33 : vector<2x1x128xf32> to vector<2x128xf32>
    %cst_21 = arith.constant dense<0.000000e+00> : vector<2x128xf32>
    %35 = tpu.matmul %29, %1, %cst_21 {dimension_numbers = #tpu.dot_dimension_numbers<[1], [0], [0], [1], [0, 0, 1, 1], [], []>} : vector<2x32xf32>, vector<32x128xf32>, vector<2x128xf32> -> vector<2x128xf32>
    %36 = arith.addf %34, %35 : vector<2x128xf32>
    %37 = math.tanh %36 : vector<2x128xf32>
    %cst_22 = arith.constant 5.000000e-01 : f32
    %38 = vector.broadcast %cst_22 : f32 to vector<2x128xf32>
    %39 = arith.mulf %38, %37 : vector<2x128xf32>
    %cst_23 = arith.constant 5.000000e-01 : f32
    %40 = vector.broadcast %cst_23 : f32 to vector<2x128xf32>
    %41 = arith.addf %39, %40 : vector<2x128xf32>
    %42 = vector.extract_strided_slice %41 {offsets = [0, 0], sizes = [2, 32], strides = [1, 1]} : vector<2x128xf32> to vector<2x32xf32>
    %43 = vector.extract_strided_slice %41 {offsets = [0, 32], sizes = [2, 32], strides = [1, 1]} : vector<2x128xf32> to vector<2x32xf32>
    %44 = vector.extract_strided_slice %37 {offsets = [0, 64], sizes = [2, 32], strides = [1, 1]} : vector<2x128xf32> to vector<2x32xf32>
    %45 = vector.extract_strided_slice %41 {offsets = [0, 96], sizes = [2, 32], strides = [1, 1]} : vector<2x128xf32> to vector<2x32xf32>
    %46 = arith.mulf %43, %27 : vector<2x32xf32>
    %47 = arith.mulf %42, %44 : vector<2x32xf32>
    %48 = arith.addf %46, %47 : vector<2x32xf32>
    %49 = math.tanh %48 : vector<2x32xf32>
    %50 = arith.mulf %45, %49 : vector<2x32xf32>
    %c0_24 = arith.constant 0 : index
    %c1 = arith.constant 1 : index
    %c0_25 = arith.constant 0 : index
    %51 = vector.load %arg11[%c0_24, %c1, %c0_25] : memref<2x8x32xf32, #tpu.memory_space<vmem>>, vector<2x1x32xf32>
    %52 = vector.shape_cast %51 : vector<2x1x32xf32> to vector<2x32xf32>
    %53 = vector.shape_cast %50 : vector<2x32xf32> to vector<2x1x32xf32>
    tpu.vector_store %arg11[%c0_24, %c1, %c0_25], %53 {strides = array<i32>} : memref<2x8x32xf32, #tpu.memory_space<vmem>>, vector<2x1x32xf32>,
    %54 = vector.extract_strided_slice %9 {offsets = [0, 2, 0], sizes = [2, 1, 128], strides = [1, 1, 1]} : vector<2x8x128xf32> to vector<2x1x128xf32>
    %55 = vector.shape_cast %54 : vector<2x1x128xf32> to vector<2x128xf32>
    %cst_26 = arith.constant dense<0.000000e+00> : vector<2x128xf32>
    %56 = tpu.matmul %50, %1, %cst_26 {dimension_numbers = #tpu.dot_dimension_numbers<[1], [0], [0], [1], [0, 0, 1, 1], [], []>} : vector<2x32xf32>, vector<32x128xf32>, vector<2x128xf32> -> vector<2x128xf32>
    %57 = arith.addf %55, %56 : vector<2x128xf32>
    %58 = math.tanh %57 : vector<2x128xf32>
    %cst_27 = arith.constant 5.000000e-01 : f32
    %59 = vector.broadcast %cst_27 : f32 to vector<2x128xf32>
    %60 = arith.mulf %59, %58 : vector<2x128xf32>
    %cst_28 = arith.constant 5.000000e-01 : f32
    %61 = vector.broadcast %cst_28 : f32 to vector<2x128xf32>
    %62 = arith.addf %60, %61 : vector<2x128xf32>
    %63 = vector.extract_strided_slice %62 {offsets = [0, 0], sizes = [2, 32], strides = [1, 1]} : vector<2x128xf32> to vector<2x32xf32>
    %64 = vector.extract_strided_slice %62 {offsets = [0, 32], sizes = [2, 32], strides = [1, 1]} : vector<2x128xf32> to vector<2x32xf32>
    %65 = vector.extract_strided_slice %58 {offsets = [0, 64], sizes = [2, 32], strides = [1, 1]} : vector<2x128xf32> to vector<2x32xf32>
    %66 = vector.extract_strided_slice %62 {offsets = [0, 96], sizes = [2, 32], strides = [1, 1]} : vector<2x128xf32> to vector<2x32xf32>
    %67 = arith.mulf %64, %48 : vector<2x32xf32>
    %68 = arith.mulf %63, %65 : vector<2x32xf32>
    %69 = arith.addf %67, %68 : vector<2x32xf32>
    %70 = math.tanh %69 : vector<2x32xf32>
    %71 = arith.mulf %66, %70 : vector<2x32xf32>
    %c0_29 = arith.constant 0 : index
    %c2 = arith.constant 2 : index
    %c0_30 = arith.constant 0 : index
    %72 = vector.load %arg11[%c0_29, %c2, %c0_30] : memref<2x8x32xf32, #tpu.memory_space<vmem>>, vector<2x1x32xf32>
    %73 = vector.shape_cast %72 : vector<2x1x32xf32> to vector<2x32xf32>
    %74 = vector.shape_cast %71 : vector<2x32xf32> to vector<2x1x32xf32>
    tpu.vector_store %arg11[%c0_29, %c2, %c0_30], %74 {strides = array<i32>} : memref<2x8x32xf32, #tpu.memory_space<vmem>>, vector<2x1x32xf32>,
    %75 = vector.extract_strided_slice %9 {offsets = [0, 3, 0], sizes = [2, 1, 128], strides = [1, 1, 1]} : vector<2x8x128xf32> to vector<2x1x128xf32>
    %76 = vector.shape_cast %75 : vector<2x1x128xf32> to vector<2x128xf32>
    %cst_31 = arith.constant dense<0.000000e+00> : vector<2x128xf32>
    %77 = tpu.matmul %71, %1, %cst_31 {dimension_numbers = #tpu.dot_dimension_numbers<[1], [0], [0], [1], [0, 0, 1, 1], [], []>} : vector<2x32xf32>, vector<32x128xf32>, vector<2x128xf32> -> vector<2x128xf32>
    %78 = arith.addf %76, %77 : vector<2x128xf32>
    %79 = math.tanh %78 : vector<2x128xf32>
    %cst_32 = arith.constant 5.000000e-01 : f32
    %80 = vector.broadcast %cst_32 : f32 to vector<2x128xf32>
    %81 = arith.mulf %80, %79 : vector<2x128xf32>
    %cst_33 = arith.constant 5.000000e-01 : f32
    %82 = vector.broadcast %cst_33 : f32 to vector<2x128xf32>
    %83 = arith.addf %81, %82 : vector<2x128xf32>
    %84 = vector.extract_strided_slice %83 {offsets = [0, 0], sizes = [2, 32], strides = [1, 1]} : vector<2x128xf32> to vector<2x32xf32>
    %85 = vector.extract_strided_slice %83 {offsets = [0, 32], sizes = [2, 32], strides = [1, 1]} : vector<2x128xf32> to vector<2x32xf32>
    %86 = vector.extract_strided_slice %79 {offsets = [0, 64], sizes = [2, 32], strides = [1, 1]} : vector<2x128xf32> to vector<2x32xf32>
    %87 = vector.extract_strided_slice %83 {offsets = [0, 96], sizes = [2, 32], strides = [1, 1]} : vector<2x128xf32> to vector<2x32xf32>
    %88 = arith.mulf %85, %69 : vector<2x32xf32>
    %89 = arith.mulf %84, %86 : vector<2x32xf32>
    %90 = arith.addf %88, %89 : vector<2x32xf32>
    %91 = math.tanh %90 : vector<2x32xf32>
    %92 = arith.mulf %87, %91 : vector<2x32xf32>
    %c0_34 = arith.constant 0 : index
    %c3 = arith.constant 3 : index
    %c0_35 = arith.constant 0 : index
    %93 = vector.load %arg11[%c0_34, %c3, %c0_35] : memref<2x8x32xf32, #tpu.memory_space<vmem>>, vector<2x1x32xf32>
    %94 = vector.shape_cast %93 : vector<2x1x32xf32> to vector<2x32xf32>
    %95 = vector.shape_cast %92 : vector<2x32xf32> to vector<2x1x32xf32>
    tpu.vector_store %arg11[%c0_34, %c3, %c0_35], %95 {strides = array<i32>} : memref<2x8x32xf32, #tpu.memory_space<vmem>>, vector<2x1x32xf32>,
    %96 = vector.extract_strided_slice %9 {offsets = [0, 4, 0], sizes = [2, 1, 128], strides = [1, 1, 1]} : vector<2x8x128xf32> to vector<2x1x128xf32>
    %97 = vector.shape_cast %96 : vector<2x1x128xf32> to vector<2x128xf32>
    %cst_36 = arith.constant dense<0.000000e+00> : vector<2x128xf32>
    %98 = tpu.matmul %92, %1, %cst_36 {dimension_numbers = #tpu.dot_dimension_numbers<[1], [0], [0], [1], [0, 0, 1, 1], [], []>} : vector<2x32xf32>, vector<32x128xf32>, vector<2x128xf32> -> vector<2x128xf32>
    %99 = arith.addf %97, %98 : vector<2x128xf32>
    %100 = math.tanh %99 : vector<2x128xf32>
    %cst_37 = arith.constant 5.000000e-01 : f32
    %101 = vector.broadcast %cst_37 : f32 to vector<2x128xf32>
    %102 = arith.mulf %101, %100 : vector<2x128xf32>
    %cst_38 = arith.constant 5.000000e-01 : f32
    %103 = vector.broadcast %cst_38 : f32 to vector<2x128xf32>
    %104 = arith.addf %102, %103 : vector<2x128xf32>
    %105 = vector.extract_strided_slice %104 {offsets = [0, 0], sizes = [2, 32], strides = [1, 1]} : vector<2x128xf32> to vector<2x32xf32>
    %106 = vector.extract_strided_slice %104 {offsets = [0, 32], sizes = [2, 32], strides = [1, 1]} : vector<2x128xf32> to vector<2x32xf32>
    %107 = vector.extract_strided_slice %100 {offsets = [0, 64], sizes = [2, 32], strides = [1, 1]} : vector<2x128xf32> to vector<2x32xf32>
    %108 = vector.extract_strided_slice %104 {offsets = [0, 96], sizes = [2, 32], strides = [1, 1]} : vector<2x128xf32> to vector<2x32xf32>
    %109 = arith.mulf %106, %90 : vector<2x32xf32>
    %110 = arith.mulf %105, %107 : vector<2x32xf32>
    %111 = arith.addf %109, %110 : vector<2x32xf32>
    %112 = math.tanh %111 : vector<2x32xf32>
    %113 = arith.mulf %108, %112 : vector<2x32xf32>
    %c0_39 = arith.constant 0 : index
    %c4 = arith.constant 4 : index
    %c0_40 = arith.constant 0 : index
    %114 = vector.load %arg11[%c0_39, %c4, %c0_40] : memref<2x8x32xf32, #tpu.memory_space<vmem>>, vector<2x1x32xf32>
    %115 = vector.shape_cast %114 : vector<2x1x32xf32> to vector<2x32xf32>
    %116 = vector.shape_cast %113 : vector<2x32xf32> to vector<2x1x32xf32>
    tpu.vector_store %arg11[%c0_39, %c4, %c0_40], %116 {strides = array<i32>} : memref<2x8x32xf32, #tpu.memory_space<vmem>>, vector<2x1x32xf32>,
    %117 = vector.extract_strided_slice %9 {offsets = [0, 5, 0], sizes = [2, 1, 128], strides = [1, 1, 1]} : vector<2x8x128xf32> to vector<2x1x128xf32>
    %118 = vector.shape_cast %117 : vector<2x1x128xf32> to vector<2x128xf32>
    %cst_41 = arith.constant dense<0.000000e+00> : vector<2x128xf32>
    %119 = tpu.matmul %113, %1, %cst_41 {dimension_numbers = #tpu.dot_dimension_numbers<[1], [0], [0], [1], [0, 0, 1, 1], [], []>} : vector<2x32xf32>, vector<32x128xf32>, vector<2x128xf32> -> vector<2x128xf32>
    %120 = arith.addf %118, %119 : vector<2x128xf32>
    %121 = math.tanh %120 : vector<2x128xf32>
    %cst_42 = arith.constant 5.000000e-01 : f32
    %122 = vector.broadcast %cst_42 : f32 to vector<2x128xf32>
    %123 = arith.mulf %122, %121 : vector<2x128xf32>
    %cst_43 = arith.constant 5.000000e-01 : f32
    %124 = vector.broadcast %cst_43 : f32 to vector<2x128xf32>
    %125 = arith.addf %123, %124 : vector<2x128xf32>
    %126 = vector.extract_strided_slice %125 {offsets = [0, 0], sizes = [2, 32], strides = [1, 1]} : vector<2x128xf32> to vector<2x32xf32>
    %127 = vector.extract_strided_slice %125 {offsets = [0, 32], sizes = [2, 32], strides = [1, 1]} : vector<2x128xf32> to vector<2x32xf32>
    %128 = vector.extract_strided_slice %121 {offsets = [0, 64], sizes = [2, 32], strides = [1, 1]} : vector<2x128xf32> to vector<2x32xf32>
    %129 = vector.extract_strided_slice %125 {offsets = [0, 96], sizes = [2, 32], strides = [1, 1]} : vector<2x128xf32> to vector<2x32xf32>
    %130 = arith.mulf %127, %111 : vector<2x32xf32>
    %131 = arith.mulf %126, %128 : vector<2x32xf32>
    %132 = arith.addf %130, %131 : vector<2x32xf32>
    %133 = math.tanh %132 : vector<2x32xf32>
    %134 = arith.mulf %129, %133 : vector<2x32xf32>
    %c0_44 = arith.constant 0 : index
    %c5 = arith.constant 5 : index
    %c0_45 = arith.constant 0 : index
    %135 = vector.load %arg11[%c0_44, %c5, %c0_45] : memref<2x8x32xf32, #tpu.memory_space<vmem>>, vector<2x1x32xf32>
    %136 = vector.shape_cast %135 : vector<2x1x32xf32> to vector<2x32xf32>
    %137 = vector.shape_cast %134 : vector<2x32xf32> to vector<2x1x32xf32>
    tpu.vector_store %arg11[%c0_44, %c5, %c0_45], %137 {strides = array<i32>} : memref<2x8x32xf32, #tpu.memory_space<vmem>>, vector<2x1x32xf32>,
    %138 = vector.extract_strided_slice %9 {offsets = [0, 6, 0], sizes = [2, 1, 128], strides = [1, 1, 1]} : vector<2x8x128xf32> to vector<2x1x128xf32>
    %139 = vector.shape_cast %138 : vector<2x1x128xf32> to vector<2x128xf32>
    %cst_46 = arith.constant dense<0.000000e+00> : vector<2x128xf32>
    %140 = tpu.matmul %134, %1, %cst_46 {dimension_numbers = #tpu.dot_dimension_numbers<[1], [0], [0], [1], [0, 0, 1, 1], [], []>} : vector<2x32xf32>, vector<32x128xf32>, vector<2x128xf32> -> vector<2x128xf32>
    %141 = arith.addf %139, %140 : vector<2x128xf32>
    %142 = math.tanh %141 : vector<2x128xf32>
    %cst_47 = arith.constant 5.000000e-01 : f32
    %143 = vector.broadcast %cst_47 : f32 to vector<2x128xf32>
    %144 = arith.mulf %143, %142 : vector<2x128xf32>
    %cst_48 = arith.constant 5.000000e-01 : f32
    %145 = vector.broadcast %cst_48 : f32 to vector<2x128xf32>
    %146 = arith.addf %144, %145 : vector<2x128xf32>
    %147 = vector.extract_strided_slice %146 {offsets = [0, 0], sizes = [2, 32], strides = [1, 1]} : vector<2x128xf32> to vector<2x32xf32>
    %148 = vector.extract_strided_slice %146 {offsets = [0, 32], sizes = [2, 32], strides = [1, 1]} : vector<2x128xf32> to vector<2x32xf32>
    %149 = vector.extract_strided_slice %142 {offsets = [0, 64], sizes = [2, 32], strides = [1, 1]} : vector<2x128xf32> to vector<2x32xf32>
    %150 = vector.extract_strided_slice %146 {offsets = [0, 96], sizes = [2, 32], strides = [1, 1]} : vector<2x128xf32> to vector<2x32xf32>
    %151 = arith.mulf %148, %132 : vector<2x32xf32>
    %152 = arith.mulf %147, %149 : vector<2x32xf32>
    %153 = arith.addf %151, %152 : vector<2x32xf32>
    %154 = math.tanh %153 : vector<2x32xf32>
    %155 = arith.mulf %150, %154 : vector<2x32xf32>
    %c0_49 = arith.constant 0 : index
    %c6 = arith.constant 6 : index
    %c0_50 = arith.constant 0 : index
    %156 = vector.load %arg11[%c0_49, %c6, %c0_50] : memref<2x8x32xf32, #tpu.memory_space<vmem>>, vector<2x1x32xf32>
    %157 = vector.shape_cast %156 : vector<2x1x32xf32> to vector<2x32xf32>
    %158 = vector.shape_cast %155 : vector<2x32xf32> to vector<2x1x32xf32>
    tpu.vector_store %arg11[%c0_49, %c6, %c0_50], %158 {strides = array<i32>} : memref<2x8x32xf32, #tpu.memory_space<vmem>>, vector<2x1x32xf32>,
    %159 = vector.extract_strided_slice %9 {offsets = [0, 7, 0], sizes = [2, 1, 128], strides = [1, 1, 1]} : vector<2x8x128xf32> to vector<2x1x128xf32>
    %160 = vector.shape_cast %159 : vector<2x1x128xf32> to vector<2x128xf32>
    %cst_51 = arith.constant dense<0.000000e+00> : vector<2x128xf32>
    %161 = tpu.matmul %155, %1, %cst_51 {dimension_numbers = #tpu.dot_dimension_numbers<[1], [0], [0], [1], [0, 0, 1, 1], [], []>} : vector<2x32xf32>, vector<32x128xf32>, vector<2x128xf32> -> vector<2x128xf32>
    %162 = arith.addf %160, %161 : vector<2x128xf32>
    %163 = math.tanh %162 : vector<2x128xf32>
    %cst_52 = arith.constant 5.000000e-01 : f32
    %164 = vector.broadcast %cst_52 : f32 to vector<2x128xf32>
    %165 = arith.mulf %164, %163 : vector<2x128xf32>
    %cst_53 = arith.constant 5.000000e-01 : f32
    %166 = vector.broadcast %cst_53 : f32 to vector<2x128xf32>
    %167 = arith.addf %165, %166 : vector<2x128xf32>
    %168 = vector.extract_strided_slice %167 {offsets = [0, 0], sizes = [2, 32], strides = [1, 1]} : vector<2x128xf32> to vector<2x32xf32>
    %169 = vector.extract_strided_slice %167 {offsets = [0, 32], sizes = [2, 32], strides = [1, 1]} : vector<2x128xf32> to vector<2x32xf32>
    %170 = vector.extract_strided_slice %163 {offsets = [0, 64], sizes = [2, 32], strides = [1, 1]} : vector<2x128xf32> to vector<2x32xf32>
    %171 = vector.extract_strided_slice %167 {offsets = [0, 96], sizes = [2, 32], strides = [1, 1]} : vector<2x128xf32> to vector<2x32xf32>
    %172 = arith.mulf %169, %153 : vector<2x32xf32>
    %173 = arith.mulf %168, %170 : vector<2x32xf32>
    %174 = arith.addf %172, %173 : vector<2x32xf32>
    %175 = math.tanh %174 : vector<2x32xf32>
    %176 = arith.mulf %171, %175 : vector<2x32xf32>
    %c0_54 = arith.constant 0 : index
    %c7 = arith.constant 7 : index
    %c0_55 = arith.constant 0 : index
    %177 = vector.load %arg11[%c0_54, %c7, %c0_55] : memref<2x8x32xf32, #tpu.memory_space<vmem>>, vector<2x1x32xf32>
    %178 = vector.shape_cast %177 : vector<2x1x32xf32> to vector<2x32xf32>
    %179 = vector.shape_cast %176 : vector<2x32xf32> to vector<2x1x32xf32>
    tpu.vector_store %arg11[%c0_54, %c7, %c0_55], %179 {strides = array<i32>} : memref<2x8x32xf32, #tpu.memory_space<vmem>>, vector<2x1x32xf32>,
    %c0_56 = arith.constant 0 : index
    %c0_57 = arith.constant 0 : index
    %c0_58 = arith.constant 0 : index
    %180 = vector.load %arg11[%c0_56, %c0_57, %c0_58] : memref<2x8x32xf32, #tpu.memory_space<vmem>>, vector<2x8x32xf32>
    %181 = vector.shape_cast %180 : vector<2x8x32xf32> to vector<16x32xf32>
    %cst_59 = arith.constant dense<0.000000e+00> : vector<16x4xf32>
    %182 = tpu.matmul %181, %3, %cst_59 {dimension_numbers = #tpu.dot_dimension_numbers<[1], [0], [0], [1], [0, 0, 1, 1], [], []>} : vector<16x32xf32>, vector<32x4xf32>, vector<16x4xf32> -> vector<16x4xf32>
    %183 = vector.broadcast %4 : vector<1x4xf32> to vector<16x4xf32>
    %184 = arith.addf %182, %183 : vector<16x4xf32>
    %c0_60 = arith.constant 0 : index
    %c0_61 = arith.constant 0 : index
    %185 = vector.load %arg8[%c0_60, %c0_61] : memref<16x4xf32, #tpu.memory_space<vmem>>, vector<16x4xf32>
    tpu.vector_store %arg8[%c0_60, %c0_61], %184 {strides = array<i32>} : memref<16x4xf32, #tpu.memory_space<vmem>>, vector<16x4xf32>,
    %c0_62 = arith.constant 0 : index
    %c0_63 = arith.constant 0 : index
    %186 = vector.load %arg9[%c0_62, %c0_63] : memref<2x32xf32, #tpu.memory_space<vmem>>, vector<2x32xf32>
    tpu.vector_store %arg9[%c0_62, %c0_63], %176 {strides = array<i32>} : memref<2x32xf32, #tpu.memory_space<vmem>>, vector<2x32xf32>,
    %c0_64 = arith.constant 0 : index
    %c0_65 = arith.constant 0 : index
    %187 = vector.load %arg10[%c0_64, %c0_65] : memref<2x32xf32, #tpu.memory_space<vmem>>, vector<2x32xf32>
    tpu.vector_store %arg10[%c0_64, %c0_65], %174 {strides = array<i32>} : memref<2x32xf32, #tpu.memory_space<vmem>>, vector<2x32xf32>,
    return
  }
}

</mosaic_0001>

<bundles_post_ra>
// kernel: tpu_custom_call.1
= control target key start
LH: loop header
LB: loop body
LE: loop exit
PB: predicated region body
PF: predicated region fallthrough
CT: control target
= control target key end

     0   :  { %16 = vsyncpa [#allocation4], 0  ;;  %vm57_vm0 = vcmask 1043456   ;;  %vm50_vm1 = vcmask 31744   ;;  %s1375_s0 = inlined_call_operand.vmem [shape: f32[16,4], index: 0, kind: input, shape index: {}]   ;;  %s1376_s1 = inlined_call_operand.vmem [shape: f32[2,32], index: 1, kind: input, shape index: {}]   ;;  %s1377_s2 = inlined_call_operand.vmem [shape: f32[2,32], index: 2, kind: input, shape index: {}]   ;;  %s1378_s3 = inlined_call_operand.vmem [shape: f32[4,128], index: 3, kind: input, shape index: {}]   ;;  %s1379_s4 = inlined_call_operand.vmem [shape: f32[32,128], index: 4, kind: input, shape index: {}]   ;;  %s1380_s5 = inlined_call_operand.vmem [shape: f32[1,128], index: 5, kind: input, shape index: {}]   ;;  %s1381_s6 = inlined_call_operand.vmem [shape: f32[32,4], index: 6, kind: input, shape index: {}]   ;;  %s1382_s7 = inlined_call_operand.vmem [shape: f32[1,4], index: 7, kind: input, shape index: {}]   ;;  %s1383_s8 = inlined_call_operand.vmem [shape: f32[16,4], index: 8, kind: output, shape index: {0}]   ;;  %s1384_s9 = inlined_call_operand.hbm [shape: f32[2,32], index: 9, kind: output, shape index: {1}]   ;;  %s1385_s10 = inlined_call_operand.hbm [shape: f32[2,32], index: 10, kind: output, shape index: {2}]  }
   0x1   :  { %v34_v0 = vld [vmem:[%s1378_s3] sm:$0xf]  ;;  %v1101_v1 = vld [vmem:[%s1379_s4 + $0x18] sm:$0xff]  ;;  %v1110_v3 = vld [vmem:[%s1379_s4 + $0x10] sm:$0xff] }
   0x2   :  { %v45_v2 = vld [vmem:[%s1375_s0] sm:$0xff]  ;;  %899 = vmatpush.msk.msra.mxu0 %vm57_vm0, %v34_v0  ;;  %102 = vmatpush.msra.mxu1 %v1101_v1  ;;  %v1116_v4 = vld [vmem:[%s1379_s4 + $0x8] sm:$0xff] }
   0x3   :  { %900 = vmatmul.msk.f32.vlgmr.msra.gmra.mxu0 %vm50_vm1, %v45_v2  ;;  %v85_v5 = vld [vmem:[%s1377_s2] sm:$0x3]  ;;  %194 = vmatpush.msra.mxu3 %v1101_v1 }
   0x4   :  { %103 = vmatpush.msra.mxu1 %v1110_v3  ;;  %v123_v6 = vrot.slane %v85_v5, 1  ;;  %465 = vmatpush.msra.mxu2 %v1101_v1  ;;  %v1127_v7 = vld [vmem:[%s1379_s4] sm:$0xff] }
   0x5   :  { %195 = vmatpush.msra.mxu3 %v1110_v3  ;;  %647 = vmatpush.msrb.mxu0 %v1101_v1 }
   0x6   :  { %17 = vsyncpa [#allocation6], 0  ;;  %104 = vmatpush.msra.mxu1 %v1116_v4  ;;  %v84_v8 = vld [vmem:[%s1376_s1] sm:$0x3]  ;;  %vm86_vm2 = vcmask 261120   ;;  %s1035_s27 = smov 32   ;;  %466 = vmatpush.msra.mxu2 %v1110_v3 }
   0x7   :  { %126 = vrot.lane.b32.xlu1 %v123_v6, %s1035_s27  ;;  %196 = vmatpush.msra.mxu3 %v1116_v4  ;;  %v46_v9 = vld [vmem:[%s1375_s0 + $0x8] sm:$0xff]  ;;  %v917_v12 = vld [vmem:[%s1380_s5] ss:$0 sm:$0xff]  ;;  %s1036_s29 = smov 64   ;;  %vm176_vm3 = vcmask 1041409   ;;  %vm172_vm4 = vcmask 253952  }
   0x8   :  { %105 = vmatpush.msra.mxu1 %v1127_v7  ;;  %648 = vmatpush.msrb.mxu0 %v1110_v3  ;;  %vm443_vm5 = vcmask 257027   ;;  %vm716_vm6 = vcmask 260102   ;;  %vm262_vm7 = vcmask 254977   ;;  %vm534_vm8 = vcmask 258052   ;;  %s1037_s5 = smov 96   ;;  %s872_s3 = sshll.u32 %s1384_s9, 4  ;;  %s873_s3 = int_to_ptr.hbm [resolvable:$true] %s872_s3 }
   0x9   :  { %902 = vmatmul.msk.f32.vlgmr.msra.gmra.mxu1 %vm86_vm2, %v84_v8  ;;  %197 = vmatpush.msra.mxu3 %v1127_v7  ;;  %vm352_vm9 = vcmask 256002   ;;  %vm625_vm10 = vcmask 259077   ;;  %vm807_vm11 = vcmask 261127   ;;  %s1039_s21 = smov [#allocation5]   ;;  %s883_s25 = sshll.u32 %s1385_s10, 4  ;;  %s884_s25 = int_to_ptr.hbm [resolvable:$true] %s883_s25 }
   0xa   :  { %374 = vmatpush.msrb.mxu1 %v1101_v1  ;;  %467 = vmatpush.msra.mxu2 %v1116_v4  ;;  %s881_s22 = sshll.u32 %s1039_s21, 4  ;;  %s882_s22 = int_to_ptr.vmem [resolvable:$true] %s881_s22 }
   0xb   :  { %283 = vmatpush.msrb.mxu3 %v1101_v1  ;;  %901 = vmatmul.msk.f32.gmra.mxu0 %vm50_vm1, %v46_v9 }
   0xc   :  { %375 = vmatpush.msrb.mxu1 %v1110_v3  ;;  %468 = vmatpush.msra.mxu2 %v1127_v7 }
   0xd   :  { %284 = vmatpush.msrb.mxu3 %v1110_v3  ;;  %649 = vmatpush.msrb.mxu0 %v1116_v4 }
   0xe   :  { %376 = vmatpush.msrb.mxu1 %v1116_v4 }
   0xf   :  { %124 = vrot.lane.b32.xlu1 %v85_v5, %s1035_s27  ;;  %285 = vmatpush.msrb.mxu3 %v1116_v4 }
  0x10   :  { %650 = vmatpush.msrb.mxu0 %v1127_v7  ;;  %377 = vmatpush.msrb.mxu1 %v1127_v7 }
  0x11   :  { %286 = vmatpush.msrb.mxu3 %v1127_v7 }
  0x12   :  { %738 = vmatpush.msra.mxu1 %v1101_v1 }
  0x14   :  { %739 = vmatpush.msra.mxu1 %v1110_v3 }
  0x16   :  { %740 = vmatpush.msra.mxu1 %v1116_v4 }
  0x18   :  { %741 = vmatpush.msra.mxu1 %v1127_v7 }
  0x79   :  { %v127_v29 = vpop.permute.xlu1 %126 }
  0x80   :  { %v78_v10 = vpop.f32.mrf.mxu0 }
  0x81   :  { %v1169_v17 = vadd.f32 %v917_v12, %v78_v10  ;;  %v125_v33 = vpop.permute.xlu1 %124 }
  0x86   :  { %v107_v11 = vpop.f32.mrf.mxu1 }
  0x87   :  { %v111_v13 = vrot.slane %v107_v11, 1  ;;  %v114_v18 = vadd.f32 %v107_v11, %v1169_v17 }
  0x88   :  { %v81_v14 = vpop.f32.mrf.mxu0 }
  0x89   :  { %v1166_v15 = vadd.f32 %v917_v12, %v81_v14 }
  0x8b   :  { %v115_v16 = vadd.f32 %v111_v13, %v1166_v15 }
  0x8d   :  { %919 = vtanh.f32 %v115_v16 }
  0x8e   :  { %921 = vtanh.f32 %v114_v18 }
  0x93   :  { %v920_v19 = vpop.eup %919 }
  0x94   :  { %136 = vrot.lane.b32.xlu0 %v920_v19, %s1036_s29  ;;  %v922_v20 = vpop.eup %921  ;;  %v119_v21 = vmul.f32 0.5, %v920_v19 }
  0x95   :  { %v118_v25 = vmul.f32 0.5, %v922_v20 }
  0x96   :  { %v121_v22 = vadd.f32 0.5, %v119_v21 }
  0x97   :  { %v120_v26 = vadd.f32 0.5, %v118_v25 }
  0x98   :  { %v131_v30 = vmul.f32 %v127_v29, %v121_v22 }
  0x99   :  { %v130_v34 = vmul.f32 %v125_v33, %v120_v26 }
  0x9c   :  { %134 = vrot.lane.b32.xlu0 %v922_v20, %s1036_s29 }
 0x106   :  { %v137_v23 = vpop.permute.xlu0 %136 }
 0x107   :  { %v141_v24 = vmul.f32 %v137_v23, %v121_v22 }
 0x109   :  { %146 = vrot.lane.b32.xlu2 %v141_v24, %s1035_s27 }
 0x10e   :  { %v135_v27 = vpop.permute.xlu0 %134 }
 0x10f   :  { %v140_v28 = vmul.f32 %v135_v27, %v120_v26 }
 0x111   :  { %144 = vrot.lane.b32.xlu2 %v140_v28, %s1035_s27 }
 0x163   :  { %v147_v31 = vpop.permute.xlu2 %146 }
 0x164   :  { %v151_v32 = vadd.f32 %v147_v31, %v131_v30 }
 0x166   :  { %923 = vtanh.f32 %v151_v32 }
 0x16b   :  { %v145_v35 = vpop.permute.xlu2 %144 }
 0x16c   :  { %v924_v36 = vpop.eup %923  ;;  %v150_v37 = vadd.f32 %v145_v35, %v130_v34 }
 0x16d   :  { %158 = vrot.lane.b32.xlu0 %v924_v36, %s1036_s29 }
 0x16e   :  { %925 = vtanh.f32 %v150_v37  ;;  %v216_v60 = vrot.slane %v150_v37, 7 }
 0x174   :  { %v926_v38 = vpop.eup %925 }
 0x175   :  { %156 = vrot.lane.b32.xlu1 %v926_v38, %s1036_s29 }
 0x1df   :  { %v159_v39 = vpop.permute.xlu0 %158 }
 0x1e0   :  { %v1178_v40 = vmul.f32 %v159_v39, %v121_v22 }
 0x1e2   :  { %v175_v42 = vrot.slane %v1178_v40, 7 }
 0x1e7   :  { %v157_v41 = vpop.permute.xlu1 %156 }
 0x1e8   :  { %v1181_v43 = vmul.f32 %v157_v41, %v120_v26 }
 0x1ea   :  { %v177_v44 = vsel %vm176_vm3, %v175_v42, %v1181_v43 }
 0x1eb   :  { %178 = vrot.lane.b32.xlu2 %v177_v44, %s1035_s27 }
 0x245   :  { %v179_v45 = vpop.permute.xlu2 %178 }
 0x246   :  { %903 = vmatmul.msk.f32.vlgmr.msra.gmra.mxu3 %vm86_vm2, %v179_v45 }
 0x247   :  { %556 = vmatpush.msra.mxu3 %v1101_v1  ;;  %v217_v1 = vrot.slane %v151_v32, 7 }
 0x249   :  { %557 = vmatpush.msra.mxu3 %v1110_v3 }
 0x24b   :  { %558 = vmatpush.msra.mxu3 %v1116_v4 }
 0x24d   :  { %559 = vmatpush.msra.mxu3 %v1127_v7 }
 0x2c9   :  { %v199_v46 = vpop.f32.mrf.mxu3 }
 0x2ca   :  { %v203_v47 = vrot.slane %v199_v46, 7  ;;  %v207_v48 = vadd.f32 %v199_v46, %v1166_v15 }
 0x2cc   :  { %v206_v49 = vadd.f32 %v203_v47, %v1169_v17  ;;  %927 = vtanh.f32 %v207_v48 }
 0x2ce   :  { %929 = vtanh.f32 %v206_v49 }
 0x2d2   :  { %v928_v50 = vpop.eup %927 }
 0x2d3   :  { %226 = vrot.lane.b32.xlu1 %v928_v50, %s1036_s29  ;;  %v211_v52 = vmul.f32 0.5, %v928_v50 }
 0x2d4   :  { %v930_v51 = vpop.eup %929 }
 0x2d5   :  { %224 = vrot.lane.b32.xlu0 %v930_v51, %s1036_s29  ;;  %v210_v53 = vmul.f32 0.5, %v930_v51  ;;  %v213_v54 = vadd.f32 0.5, %v211_v52 }
 0x2d7   :  { %v212_v57 = vadd.f32 0.5, %v210_v53  ;;  %v221_v2 = vmul.f32 %v217_v1, %v213_v54 }
 0x2d9   :  { %v220_v61 = vmul.f32 %v216_v60, %v212_v57 }
 0x345   :  { %v227_v55 = vpop.permute.xlu1 %226 }
 0x346   :  { %v231_v56 = vmul.f32 %v227_v55, %v213_v54 }
 0x347   :  { %v225_v58 = vpop.permute.xlu0 %224 }
 0x348   :  { %v230_v59 = vmul.f32 %v225_v58, %v212_v57  ;;  %236 = vrot.lane.b32.xlu0 %v231_v56, %s1035_s27 }
 0x34a   :  { %234 = vrot.lane.b32.xlu2 %v230_v59, %s1035_s27 }
 0x3a4   :  { %v235_v62 = vpop.permute.xlu2 %234 }
 0x3a5   :  { %v240_v63 = vadd.f32 %v235_v62, %v220_v61 }
 0x3a7   :  { %931 = vtanh.f32 %v240_v63  ;;  %v306_v35 = vrot.slane %v240_v63, 7 }
 0x3ad   :  { %v932_v0 = vpop.eup %931 }
 0x3ae   :  { %246 = vrot.lane.b32.xlu1 %v932_v0, %s1036_s29 }
 0x3ba   :  { %v237_v3 = vpop.permute.xlu0 %236 }
 0x3bb   :  { %v241_v4 = vadd.f32 %v237_v3, %v221_v2 }
 0x3bd   :  { %933 = vtanh.f32 %v241_v4  ;;  %v307_v30 = vrot.slane %v241_v4, 7 }
 0x3c3   :  { %v934_v5 = vpop.eup %933 }
 0x3c4   :  { %248 = vrot.lane.b32.xlu2 %v934_v5, %s1036_s29 }
 0x41e   :  { %v249_v6 = vpop.permute.xlu2 %248 }
 0x41f   :  { %v1201_v9 = vmul.f32 %v249_v6, %v213_v54 }
 0x420   :  { %v247_v7 = vpop.permute.xlu1 %246 }
 0x421   :  { %v1199_v8 = vmul.f32 %v247_v7, %v212_v57 }
 0x423   :  { %v265_v10 = vrot.slane %v1199_v8, 1 }
 0x425   :  { %v266_v11 = vsel %vm176_vm3, %v1201_v9, %v265_v10 }
 0x426   :  { %267 = vrot.lane.b32.xlu0 %v266_v11, %s1035_s27 }
 0x498   :  { %v268_v12 = vpop.permute.xlu0 %267 }
 0x499   :  { %904 = vmatmul.msk.f32.vlgmr.msrb.gmra.mxu3 %vm86_vm2, %v268_v12 }
 0x51c   :  { %v288_v13 = vpop.f32.mrf.mxu3 }
 0x51d   :  { %v292_v14 = vrot.slane %v288_v13, 6  ;;  %v293_v16 = vrot.slane %v288_v13, 7 }
 0x51f   :  { %v296_v18 = vadd.f32 %v292_v14, %v1169_v17  ;;  %v297_v19 = vadd.f32 %v293_v16, %v1166_v15 }
 0x521   :  { %935 = vtanh.f32 %v296_v18 }
 0x522   :  { %937 = vtanh.f32 %v297_v19 }
 0x527   :  { %v936_v20 = vpop.eup %935 }
 0x528   :  { %v938_v21 = vpop.eup %937  ;;  %314 = vrot.lane.b32.xlu1 %v936_v20, %s1036_s29  ;;  %v300_v26 = vmul.f32 0.5, %v936_v20 }
 0x529   :  { %316 = vrot.lane.b32.xlu2 %v938_v21, %s1036_s29  ;;  %v301_v22 = vmul.f32 0.5, %v938_v21 }
 0x52a   :  { %v302_v27 = vadd.f32 0.5, %v300_v26 }
 0x52b   :  { %v303_v23 = vadd.f32 0.5, %v301_v22 }
 0x52c   :  { %v310_v36 = vmul.f32 %v306_v35, %v302_v27 }
 0x52d   :  { %v311_v31 = vmul.f32 %v307_v30, %v303_v23 }
 0x583   :  { %v317_v24 = vpop.permute.xlu2 %316 }
 0x584   :  { %v321_v25 = vmul.f32 %v317_v24, %v303_v23 }
 0x586   :  { %326 = vrot.lane.b32.xlu1 %v321_v25, %s1035_s27 }
 0x59a   :  { %v315_v28 = vpop.permute.xlu1 %314 }
 0x59b   :  { %v320_v29 = vmul.f32 %v315_v28, %v302_v27 }
 0x59d   :  { %324 = vrot.lane.b32.xlu0 %v320_v29, %s1035_s27 }
 0x5f8   :  { %v327_v32 = vpop.permute.xlu1 %326 }
 0x5f9   :  { %v331_v33 = vadd.f32 %v327_v32, %v311_v31 }
 0x5fb   :  { %939 = vtanh.f32 %v331_v33  ;;  %v398_v2 = vrot.slane %v331_v33, 7 }
 0x601   :  { %v940_v34 = vpop.eup %939 }
 0x602   :  { %338 = vrot.lane.b32.xlu0 %v940_v34, %s1036_s29 }
 0x60f   :  { %v325_v37 = vpop.permute.xlu0 %324 }
 0x610   :  { %v330_v38 = vadd.f32 %v325_v37, %v310_v36 }
 0x612   :  { %941 = vtanh.f32 %v330_v38  ;;  %v397_v1 = vrot.slane %v330_v38, 7 }
 0x618   :  { %v942_v39 = vpop.eup %941 }
 0x619   :  { %336 = vrot.lane.b32.xlu2 %v942_v39, %s1036_s29 }
 0x673   :  { %v337_v41 = vpop.permute.xlu2 %336 }
 0x674   :  { %v339_v42 = vpop.permute.xlu0 %338  ;;  %v1216_v44 = vmul.f32 %v337_v41, %v302_v27 }
 0x675   :  { %v1218_v45 = vmul.f32 %v339_v42, %v303_v23 }
 0x676   :  { %v355_v46 = vrot.slane %v1216_v44, 2 }
 0x677   :  { %v356_v47 = vrot.slane %v1218_v45, 1 }
 0x679   :  { %v357_v48 = vsel %vm176_vm3, %v356_v47, %v355_v46 }
 0x67a   :  { %358 = vrot.lane.b32.xlu1 %v357_v48, %s1035_s27 }
 0x6ec   :  { %v359_v49 = vpop.permute.xlu1 %358 }
 0x6ed   :  { %905 = vmatmul.msk.f32.vlgmr.msrb.gmra.mxu1 %vm86_vm2, %v359_v49 }
 0x76a   :  { %v379_v50 = vpop.f32.mrf.mxu1 }
 0x76b   :  { %v383_v51 = vrot.slane %v379_v50, 5  ;;  %v384_v52 = vrot.slane %v379_v50, 6 }
 0x76d   :  { %v387_v53 = vadd.f32 %v383_v51, %v1169_v17  ;;  %v388_v54 = vadd.f32 %v384_v52, %v1166_v15 }
 0x76f   :  { %943 = vtanh.f32 %v387_v53 }
 0x770   :  { %945 = vtanh.f32 %v388_v54 }
 0x775   :  { %v944_v55 = vpop.eup %943 }
 0x776   :  { %v946_v56 = vpop.eup %945  ;;  %405 = vrot.lane.b32.xlu2 %v944_v55, %s1036_s29  ;;  %v391_v57 = vmul.f32 0.5, %v944_v55 }
 0x777   :  { %407 = vrot.lane.b32.xlu0 %v946_v56, %s1036_s29  ;;  %v392_v61 = vmul.f32 0.5, %v946_v56 }
 0x778   :  { %v393_v58 = vadd.f32 0.5, %v391_v57 }
 0x779   :  { %v394_v62 = vadd.f32 0.5, %v392_v61 }
 0x77a   :  { %v401_v3 = vmul.f32 %v397_v1, %v393_v58 }
 0x77b   :  { %v402_v4 = vmul.f32 %v398_v2, %v394_v62 }
 0x7d0   :  { %v406_v59 = vpop.permute.xlu2 %405 }
 0x7d1   :  { %v411_v60 = vmul.f32 %v406_v59, %v393_v58 }
 0x7d3   :  { %415 = vrot.lane.b32.xlu1 %v411_v60, %s1035_s27 }
 0x7e9   :  { %v408_v63 = vpop.permute.xlu0 %407 }
 0x7ea   :  { %v412_v0 = vmul.f32 %v408_v63, %v394_v62 }
 0x7ec   :  { %417 = vrot.lane.b32.xlu2 %v412_v0, %s1035_s27 }
 0x845   :  { %v416_v5 = vpop.permute.xlu1 %415 }
 0x846   :  { %v418_v6 = vpop.permute.xlu2 %417  ;;  %v421_v7 = vadd.f32 %v416_v5, %v401_v3 }
 0x847   :  { %v422_v10 = vadd.f32 %v418_v6, %v402_v4 }
 0x848   :  { %947 = vtanh.f32 %v421_v7  ;;  %v488_v38 = vrot.slane %v421_v7, 7 }
 0x849   :  { %949 = vtanh.f32 %v422_v10  ;;  %v489_v47 = vrot.slane %v422_v10, 7 }
 0x84e   :  { %v948_v11 = vpop.eup %947 }
 0x84f   :  { %v950_v12 = vpop.eup %949  ;;  %427 = vrot.lane.b32.xlu0 %v948_v11, %s1036_s29 }
 0x850   :  { %429 = vrot.lane.b32.xlu1 %v950_v12, %s1036_s29 }
 0x8c1   :  { %v428_v13 = vpop.permute.xlu0 %427 }
 0x8c2   :  { %v430_v14 = vpop.permute.xlu1 %429  ;;  %v1233_v16 = vmul.f32 %v428_v13, %v393_v58 }
 0x8c3   :  { %v1235_v18 = vmul.f32 %v430_v14, %v394_v62 }
 0x8c4   :  { %v446_v19 = vrot.slane %v1233_v16, 3 }
 0x8c5   :  { %v447_v20 = vrot.slane %v1235_v18, 2 }
 0x8c7   :  { %v448_v21 = vsel %vm176_vm3, %v447_v20, %v446_v19 }
 0x8c8   :  { %449 = vrot.lane.b32.xlu2 %v448_v21, %s1035_s27 }
 0x922   :  { %v450_v22 = vpop.permute.xlu2 %449 }
 0x923   :  { %906 = vmatmul.msk.f32.vlgmr.msra.gmra.mxu2 %vm86_vm2, %v450_v22 }
 0x9a6   :  { %v470_v23 = vpop.f32.mrf.mxu2 }
 0x9a7   :  { %v474_v24 = vrot.slane %v470_v23, 4  ;;  %v475_v25 = vrot.slane %v470_v23, 5 }
 0x9a9   :  { %v478_v26 = vadd.f32 %v474_v24, %v1169_v17  ;;  %v479_v27 = vadd.f32 %v475_v25, %v1166_v15 }
 0x9ab   :  { %951 = vtanh.f32 %v478_v26 }
 0x9ac   :  { %953 = vtanh.f32 %v479_v27 }
 0x9b1   :  { %v952_v28 = vpop.eup %951 }
 0x9b2   :  { %v954_v29 = vpop.eup %953  ;;  %496 = vrot.lane.b32.xlu0 %v952_v28, %s1036_s29  ;;  %v482_v30 = vmul.f32 0.5, %v952_v28 }
 0x9b3   :  { %498 = vrot.lane.b32.xlu1 %v954_v29, %s1036_s29  ;;  %v483_v31 = vmul.f32 0.5, %v954_v29 }
 0x9b4   :  { %v484_v32 = vadd.f32 0.5, %v482_v30 }
 0x9b5   :  { %v485_v33 = vadd.f32 0.5, %v483_v31 }
 0x9b6   :  { %v492_v39 = vmul.f32 %v488_v38, %v484_v32 }
 0x9b7   :  { %v493_v48 = vmul.f32 %v489_v47, %v485_v33 }
 0xa24   :  { %v497_v34 = vpop.permute.xlu0 %496 }
 0xa25   :  { %v499_v35 = vpop.permute.xlu1 %498  ;;  %v502_v36 = vmul.f32 %v497_v34, %v484_v32 }
 0xa26   :  { %v503_v37 = vmul.f32 %v499_v35, %v485_v33 }
 0xa27   :  { %506 = vrot.lane.b32.xlu2 %v502_v36, %s1035_s27 }
 0xa28   :  { %508 = vrot.lane.b32.xlu0 %v503_v37, %s1035_s27 }
 0xa81   :  { %v507_v41 = vpop.permute.xlu2 %506 }
 0xa82   :  { %v512_v42 = vadd.f32 %v507_v41, %v492_v39 }
 0xa84   :  { %955 = vtanh.f32 %v512_v42  ;;  %v579_v22 = vrot.slane %v512_v42, 7 }
 0xa8a   :  { %v956_v46 = vpop.eup %955 }
 0xa8b   :  { %518 = vrot.lane.b32.xlu1 %v956_v46, %s1036_s29 }
 0xa9a   :  { %v509_v49 = vpop.permute.xlu0 %508 }
 0xa9b   :  { %v513_v50 = vadd.f32 %v509_v49, %v493_v48 }
 0xa9d   :  { %957 = vtanh.f32 %v513_v50  ;;  %v580_v13 = vrot.slane %v513_v50, 7 }
 0xaa3   :  { %v958_v51 = vpop.eup %957 }
 0xaa4   :  { %520 = vrot.lane.b32.xlu2 %v958_v51, %s1036_s29 }
 0xafd   :  { %v519_v52 = vpop.permute.xlu1 %518 }
 0xafe   :  { %v521_v53 = vpop.permute.xlu2 %520  ;;  %v1250_v54 = vmul.f32 %v519_v52, %v484_v32 }
 0xaff   :  { %v1252_v55 = vmul.f32 %v521_v53, %v485_v33 }
 0xb00   :  { %v537_v56 = vrot.slane %v1250_v54, 4 }
 0xb01   :  { %v538_v57 = vrot.slane %v1252_v55, 3 }
 0xb03   :  { %v539_v58 = vsel %vm176_vm3, %v538_v57, %v537_v56 }
 0xb04   :  { %540 = vrot.lane.b32.xlu0 %v539_v58, %s1035_s27 }
 0xb76   :  { %v541_v59 = vpop.permute.xlu0 %540 }
 0xb77   :  { %907 = vmatmul.msk.f32.vlgmr.msra.gmra.mxu3 %vm86_vm2, %v541_v59 }
 0xbfa   :  { %v561_v60 = vpop.f32.mrf.mxu3 }
 0xbfb   :  { %v565_v61 = vrot.slane %v561_v60, 3  ;;  %v566_v62 = vrot.slane %v561_v60, 4 }
 0xbfd   :  { %v569_v63 = vadd.f32 %v565_v61, %v1169_v17  ;;  %v570_v0 = vadd.f32 %v566_v62, %v1166_v15 }
 0xbff   :  { %959 = vtanh.f32 %v569_v63 }
 0xc00   :  { %961 = vtanh.f32 %v570_v0 }
 0xc05   :  { %v960_v1 = vpop.eup %959 }
 0xc06   :  { %v962_v2 = vpop.eup %961  ;;  %587 = vrot.lane.b32.xlu1 %v960_v1, %s1036_s29  ;;  %v573_v7 = vmul.f32 0.5, %v960_v1 }
 0xc07   :  { %589 = vrot.lane.b32.xlu2 %v962_v2, %s1036_s29  ;;  %v574_v3 = vmul.f32 0.5, %v962_v2 }
 0xc08   :  { %v575_v10 = vadd.f32 0.5, %v573_v7 }
 0xc09   :  { %v576_v4 = vadd.f32 0.5, %v574_v3 }
 0xc0a   :  { %v583_v23 = vmul.f32 %v579_v22, %v575_v10 }
 0xc0b   :  { %v584_v14 = vmul.f32 %v580_v13, %v576_v4 }
 0xc61   :  { %v590_v5 = vpop.permute.xlu2 %589 }
 0xc62   :  { %v594_v6 = vmul.f32 %v590_v5, %v576_v4 }
 0xc64   :  { %599 = vrot.lane.b32.xlu1 %v594_v6, %s1035_s27 }
 0xc78   :  { %v588_v11 = vpop.permute.xlu1 %587 }
 0xc79   :  { %v593_v12 = vmul.f32 %v588_v11, %v575_v10 }
 0xc7b   :  { %597 = vrot.lane.b32.xlu0 %v593_v12, %s1035_s27 }
 0xcd6   :  { %v600_v19 = vpop.permute.xlu1 %599 }
 0xcd7   :  { %v604_v20 = vadd.f32 %v600_v19, %v584_v14 }
 0xcd9   :  { %963 = vtanh.f32 %v604_v20  ;;  %v671_v57 = vrot.slane %v604_v20, 7 }
 0xcdf   :  { %v964_v21 = vpop.eup %963 }
 0xce0   :  { %611 = vrot.lane.b32.xlu0 %v964_v21, %s1036_s29 }
 0xced   :  { %v598_v24 = vpop.permute.xlu0 %597 }
 0xcee   :  { %v603_v25 = vadd.f32 %v598_v24, %v583_v23 }
 0xcf0   :  { %965 = vtanh.f32 %v603_v25  ;;  %v670_v56 = vrot.slane %v603_v25, 7 }
 0xcf6   :  { %v966_v26 = vpop.eup %965 }
 0xcf7   :  { %609 = vrot.lane.b32.xlu2 %v966_v26, %s1036_s29 }
 0xd51   :  { %v610_v27 = vpop.permute.xlu2 %609 }
 0xd52   :  { %v612_v28 = vpop.permute.xlu0 %611  ;;  %v1267_v29 = vmul.f32 %v610_v27, %v575_v10 }
 0xd53   :  { %v1269_v30 = vmul.f32 %v612_v28, %v576_v4 }
 0xd54   :  { %v628_v31 = vrot.slane %v1267_v29, 5 }
 0xd55   :  { %v629_v32 = vrot.slane %v1269_v30, 4 }
 0xd57   :  { %v630_v33 = vsel %vm176_vm3, %v629_v32, %v628_v31 }
 0xd58   :  { %631 = vrot.lane.b32.xlu1 %v630_v33, %s1035_s27 }
 0xdca   :  { %v632_v34 = vpop.permute.xlu1 %631 }
 0xdcb   :  { %908 = vmatmul.msk.f32.vlgmr.msrb.gmra.mxu0 %vm86_vm2, %v632_v34 }
 0xe48   :  { %v652_v35 = vpop.f32.mrf.mxu0 }
 0xe49   :  { %v656_v36 = vrot.slane %v652_v35, 2  ;;  %v657_v37 = vrot.slane %v652_v35, 3 }
 0xe4b   :  { %v660_v38 = vadd.f32 %v656_v36, %v1169_v17  ;;  %v661_v39 = vadd.f32 %v657_v37, %v1166_v15 }
 0xe4d   :  { %967 = vtanh.f32 %v660_v38 }
 0xe4e   :  { %969 = vtanh.f32 %v661_v39 }
 0xe53   :  { %v968_v41 = vpop.eup %967 }
 0xe54   :  { %v970_v42 = vpop.eup %969  ;;  %678 = vrot.lane.b32.xlu2 %v968_v41, %s1036_s29  ;;  %v664_v46 = vmul.f32 0.5, %v968_v41 }
 0xe55   :  { %680 = vrot.lane.b32.xlu0 %v970_v42, %s1036_s29  ;;  %v665_v50 = vmul.f32 0.5, %v970_v42 }
 0xe56   :  { %v666_v47 = vadd.f32 0.5, %v664_v46 }
 0xe57   :  { %v667_v51 = vadd.f32 0.5, %v665_v50 }
 0xe58   :  { %v674_v58 = vmul.f32 %v670_v56, %v666_v47  ;;  %v42_v56 = vld [vmem:[%s1381_s6 + $0x10] sm:$0xff] }
 0xe59   :  { %v675_v59 = vmul.f32 %v671_v57, %v667_v51  ;;  %v41_v57 = vld [vmem:[%s1381_s6 + $0x8] sm:$0xff] }
 0xeae   :  { %v679_v48 = vpop.permute.xlu2 %678 }
 0xeaf   :  { %v684_v49 = vmul.f32 %v679_v48, %v666_v47 }
 0xeb1   :  { %688 = vrot.lane.b32.xlu1 %v684_v49, %s1035_s27 }
 0xec7   :  { %v681_v52 = vpop.permute.xlu0 %680 }
 0xec8   :  { %v685_v53 = vmul.f32 %v681_v52, %v667_v51 }
 0xeca   :  { %690 = vrot.lane.b32.xlu2 %v685_v53, %s1035_s27  ;;  %v43_v53 = vld [vmem:[%s1381_s6 + $0x18] sm:$0xff] }
 0xecb   :  { %833 = vmatpush.msrb.mxu2 %v43_v53 }
 0xecd   :  { %834 = vmatpush.msrb.mxu2 %v42_v56 }
 0xecf   :  { %835 = vmatpush.msrb.mxu2 %v41_v57 }
 0xf23   :  { %v689_v60 = vpop.permute.xlu1 %688 }
 0xf24   :  { %v691_v61 = vpop.permute.xlu2 %690  ;;  %v694_v62 = vadd.f32 %v689_v60, %v674_v58  ;;  %v40_v58 = vld [vmem:[%s1381_s6] sm:$0xff]  ;;  %s1038_s6 = smov [#allocation3]  }
 0xf25   :  { %v695_v63 = vadd.f32 %v691_v61, %v675_v59  ;;  %836 = vmatpush.msrb.mxu2 %v40_v58  ;;  %s870_s18 = sshll.u32 %s1038_s6, 4  ;;  %s871_s18 = int_to_ptr.vmem [resolvable:$true] %s870_s18 }
 0xf26   :  { %971 = vtanh.f32 %v694_v62 }
 0xf27   :  { %973 = vtanh.f32 %v695_v63 }
 0xf2c   :  { %v972_v0 = vpop.eup %971 }
 0xf2d   :  { %v974_v1 = vpop.eup %973  ;;  %700 = vrot.lane.b32.xlu0 %v972_v0, %s1036_s29 }
 0xf2e   :  { %702 = vrot.lane.b32.xlu1 %v974_v1, %s1036_s29 }
 0xf9f   :  { %v701_v2 = vpop.permute.xlu0 %700 }
 0xfa0   :  { %v703_v3 = vpop.permute.xlu1 %702  ;;  %v706_v4 = vmul.f32 %v701_v2, %v666_v47  ;;  %v918_v2 = vld [vmem:[%s1382_s7] ss:$0 sm:$0xff] }
 0xfa1   :  { %v1284_v5 = vmul.f32 %v703_v3, %v667_v51 }
 0xfa2   :  { %v719_v6 = vrot.slane %v706_v4, 6 }
 0xfa3   :  { %v720_v7 = vrot.slane %v1284_v5, 5 }
 0xfa5   :  { %v721_v10 = vsel %vm176_vm3, %v720_v7, %v719_v6 }
 0xfa6   :  { %722 = vrot.lane.b32.xlu2 %v721_v10, %s1035_s27 }
0x1000   :  { %v723_v11 = vpop.permute.xlu2 %722 }
0x1001   :  { %909 = vmatmul.msk.f32.vlgmr.msra.gmra.mxu1 %vm86_vm2, %v723_v11 }
0x107e   :  { %v743_v12 = vpop.f32.mrf.mxu1 }
0x107f   :  { %v747_v13 = vrot.slane %v743_v12, 1  ;;  %v748_v14 = vrot.slane %v743_v12, 2 }
0x1081   :  { %v751_v19 = vadd.f32 %v747_v13, %v1169_v17  ;;  %v752_v20 = vadd.f32 %v748_v14, %v1166_v15  ;;  %v761_v15 = vrot.slane %v694_v62, 7 }
0x1083   :  { %975 = vtanh.f32 %v751_v19 }
0x1084   :  { %977 = vtanh.f32 %v752_v20 }
0x1089   :  { %v976_v21 = vpop.eup %975 }
0x108a   :  { %v978_v22 = vpop.eup %977  ;;  %769 = vrot.lane.b32.xlu0 %v976_v21, %s1036_s29  ;;  %v755_v23 = vmul.f32 0.5, %v976_v21 }
0x108b   :  { %771 = vrot.lane.b32.xlu1 %v978_v22, %s1036_s29  ;;  %v756_v24 = vmul.f32 0.5, %v978_v22 }
0x108c   :  { %v757_v25 = vadd.f32 0.5, %v755_v23 }
0x108d   :  { %v758_v26 = vadd.f32 0.5, %v756_v24 }
0x108e   :  { %v765_v17 = vmul.f32 %v761_v15, %v757_v25 }
0x10fc   :  { %v770_v27 = vpop.permute.xlu0 %769 }
0x10fd   :  { %v772_v28 = vpop.permute.xlu1 %771  ;;  %v775_v31 = vmul.f32 %v770_v27, %v757_v25 }
0x10fe   :  { %v776_v32 = vmul.f32 %v772_v28, %v758_v26 }
0x10ff   :  { %779 = vrot.lane.b32.xlu2 %v775_v31, %s1035_s27 }
0x1100   :  { %781 = vrot.lane.b32.xlu0 %v776_v32, %s1035_s27 }
0x1108   :  { %166 = vrot.lane.b32.xlu0 %v1181_v43, %s1035_s27  ;;  %v762_v43 = vrot.slane %v695_v63, 7 }
0x1110   :  { %437 = vrot.lane.b32.xlu0 %v1233_v16, %s1035_s27  ;;  %v766_v16 = vmul.f32 %v762_v43, %v758_v26 }
0x1118   :  { %710 = vrot.lane.b32.xlu0 %v706_v4, %s1035_s27 }
0x1120   :  { %258 = vrot.lane.b32.xlu0 %v1201_v9, %s1035_s27 }
0x1128   :  { %530 = vrot.lane.b32.xlu0 %v1252_v55, %s1035_s27 }
0x1159   :  { %v780_v33 = vpop.permute.xlu2 %779 }
0x115a   :  { %v785_v34 = vadd.f32 %v780_v33, %v765_v17 }
0x115c   :  { %979 = vtanh.f32 %v785_v34 }
0x1162   :  { %v980_v35 = vpop.eup %979 }
0x1163   :  { %791 = vrot.lane.b32.xlu1 %v980_v35, %s1036_s29 }
0x116b   :  { %256 = vrot.lane.b32.xlu1 %v1199_v8, %s1035_s27 }
0x1172   :  { %v782_v36 = vpop.permute.xlu0 %781 }
0x1173   :  { %v786_v37 = vadd.f32 %v782_v36, %v766_v16  ;;  %528 = vrot.lane.b32.xlu1 %v1250_v54, %s1035_s27 }
0x1175   :  { %981 = vtanh.f32 %v786_v37  ;;  %v854_v46 = vrot.slane %v786_v37, 7 }
0x117a   :  { %v167_v9 = vpop.permute.xlu0 %166 }
0x117b   :  { %v982_v55 = vpop.eup %981  ;;  %173 = vst.msk [vmem:[#allocation2] sm:$0x1] %vm172_vm4, %v167_v9  ;;  %348 = vrot.lane.b32.xlu1 %v1218_v45, %s1035_s27 }
0x117c   :  { %793 = vrot.lane.b32.xlu2 %v982_v55, %s1036_s29 }
0x1182   :  { %v438_v8 = vpop.permute.xlu0 %437 }
0x1183   :  { %444 = vst.msk [vmem:[#allocation2] sm:$0x8] %vm443_vm5, %v438_v8 }
0x1184   :  { %346 = vrot.lane.b32.xlu2 %v1216_v44, %s1035_s27 }
0x118a   :  { %v711_v54 = vpop.permute.xlu0 %710 }
0x118b   :  { %717 = vst.msk [vmem:[#allocation2] sm:$0x40] %vm716_vm6, %v711_v54 }
0x118c   :  { %619 = vrot.lane.b32.xlu2 %v1267_v29, %s1035_s27 }
0x1192   :  { %v259_v38 = vpop.permute.xlu0 %258 }
0x1193   :  { %264 = vst.msk [vmem:[#allocation2 + $0x8] sm:$0x2] %vm262_vm7, %v259_v38 }
0x1194   :  { %168 = vrot.lane.b32.xlu2 %v1178_v40, %s1035_s27 }
0x119a   :  { %v531_v45 = vpop.permute.xlu0 %530 }
0x119b   :  { %536 = vst.msk [vmem:[#allocation2 + $0x8] sm:$0x10] %vm534_vm8, %v531_v45 }
0x119c   :  { %439 = vrot.lane.b32.xlu2 %v1235_v18, %s1035_s27 }
0x11a4   :  { %712 = vrot.lane.b32.xlu2 %v1284_v5, %s1035_s27 }
0x11ac   :  { %855 = vrot.lane.b32.xlu2 %v785_v34, %s1037_s5 }
0x11d5   :  { %v792_v44 = vpop.permute.xlu1 %791 }
0x11d6   :  { %v794_v29 = vpop.permute.xlu2 %793  ;;  %v797_v39 = vmul.f32 %v792_v44, %v757_v25 }
0x11d7   :  { %v798_v41 = vmul.f32 %v794_v29, %v758_v26 }
0x11d8   :  { %801 = vrot.lane.b32.xlu1 %v797_v39, %s1035_s27 }
0x11d9   :  { %803 = vrot.lane.b32.xlu0 %v798_v41, %s1035_s27  ;;  %v846_v47 = vrot.slane %v798_v41, 7 }
0x11dd   :  { %v257_v40 = vpop.permute.xlu1 %256 }
0x11de   :  { %v347_v42 = vpop.permute.xlu2 %346  ;;  %263 = vst.msk [vmem:[#allocation2] sm:$0x2] %vm262_vm7, %v257_v40 }
0x11df   :  { %353 = vst.msk [vmem:[#allocation2] sm:$0x4] %vm352_vm9, %v347_v42 }
0x11e0   :  { %621 = vrot.lane.b32.xlu1 %v1269_v30, %s1035_s27 }
0x11e1   :  { %857 = vrot.lane.b32.xlu0 %v854_v46, %s1037_s5 }
0x11e5   :  { %v529_v18 = vpop.permute.xlu1 %528 }
0x11e6   :  { %v620_v48 = vpop.permute.xlu2 %619  ;;  %535 = vst.msk [vmem:[#allocation2] sm:$0x10] %vm534_vm8, %v529_v18 }
0x11e7   :  { %626 = vst.msk [vmem:[#allocation2] sm:$0x20] %vm625_vm10, %v620_v48 }
0x11e8   :  { %847 = vrot.lane.b32.xlu1 %v846_v47, %s1035_s27 }
0x11ed   :  { %v349_v49 = vpop.permute.xlu1 %348 }
0x11ee   :  { %v169_v50 = vpop.permute.xlu2 %168  ;;  %354 = vst.msk [vmem:[#allocation2 + $0x8] sm:$0x4] %vm352_vm9, %v349_v49 }
0x11ef   :  { %174 = vst.msk [vmem:[#allocation2 + $0x8] sm:$0x1] %vm172_vm4, %v169_v50 }
0x11f6   :  { %v440_v51 = vpop.permute.xlu2 %439 }
0x11f7   :  { %445 = vst.msk [vmem:[#allocation2 + $0x8] sm:$0x8] %vm443_vm5, %v440_v51 }
0x11fe   :  { %v713_v30 = vpop.permute.xlu2 %712 }
0x11ff   :  { %718 = vst.msk [vmem:[#allocation2 + $0x8] sm:$0x40] %vm716_vm6, %v713_v30 }
0x1206   :  { %v856_v52 = vpop.permute.xlu2 %855 }
0x1207   :  { %861 = vst.msk [vmem:[#allocation5 - $0x7] sm:$0x80] %vm807_vm11, %v856_v52 }
0x124a   :  { %v802_v59 = vpop.permute.xlu1 %801 }
0x124b   :  { %v804_v60 = vpop.permute.xlu0 %803  ;;  %808 = vst.msk [vmem:[#allocation2] sm:$0x80] %vm807_vm11, %v802_v59 }
0x124c   :  { %809 = vst.msk [vmem:[#allocation2 + $0x8] sm:$0x80] %vm807_vm11, %v804_v60 }
0x124d   :  { %850 = vst.msk [vmem:[#allocation3 - $0x7] sm:$0x80] %vm807_vm11, %v802_v59 }
0x1252   :  { %v622_v61 = vpop.permute.xlu1 %621  ;;  %v810_v62 = vld [vmem:[#allocation2] sm:$0xff] }
0x1253   :  { %v858_v63 = vpop.permute.xlu0 %857  ;;  %627 = vst.msk [vmem:[#allocation2 + $0x8] sm:$0x20] %vm625_vm10, %v622_v61  ;;  %910 = vmatmul.msk.f32.vlgmr.msrb.gmra.mxu2 %vm86_vm2, %v810_v62 }
0x1254   :  { %862 = vst.msk [vmem:[#allocation5 + $0x1] sm:$0x1] %vm172_vm4, %v858_v63 }
0x1255   :  { %886 = dma.vmem_to_hbm [thread:$0]  %s882_s22, 32, %s884_s25, [#allocation6]  }
0x125a   :  { %v848_v0 = vpop.permute.xlu1 %847  ;;  %v811_v1 = vld [vmem:[#allocation2 + $0x8] sm:$0xff] }
0x125b   :  { %851 = vst.msk [vmem:[#allocation3 + $0x1] sm:$0x1] %vm172_vm4, %v848_v0  ;;  %911 = vmatmul.msk.f32.gmra.mxu2 %vm86_vm2, %v811_v1 }
0x125c   :  { %875 = dma.vmem_to_hbm [thread:$0]  %s871_s18, 32, %s873_s3, [#allocation4]  }
0x12d6   :  { %v838_v3 = vpop.f32.mrf.mxu2 }
0x12d7   :  { %v839_v4 = vadd.f32 %v918_v2, %v838_v3 }
0x12d9   :  { %844 = vst.msk [vmem:[%s1383_s8] sm:$0xff] %vm50_vm1, %v839_v4 }
0x12de   :  { %v841_v5 = vpop.f32.mrf.mxu2 }
0x12df   :  { %v842_v6 = vadd.f32 %v918_v2, %v841_v5 }
0x12e1   :  { %845 = vst.msk [vmem:[%s1383_s8 + $0x8] sm:$0xff] %vm50_vm1, %v842_v6 }
0x12e2   :  { %1031 = dma.done.wait [#allocation4], 32  }
0x12e3   :  { %1032 = vsyncadd [#allocation4], 4294967264 }
0x12e4   :  { %1033 = dma.done.wait [#allocation6], 32  }
0x12e5   :  { %1034 = vsyncadd [#allocation6], 4294967264 }
0x12e6   :  { %897 = vsyncpa [#allocation4], 1 }
0x12e7   :  { %898 = vsyncpa [#allocation6], 1 }

</bundles_post_ra>
